<compile_context>
chip_gen: v7x
topology: tpu7x:2x2x1
jax: 0.10.0
libtpu: 0.0.40
codegen_flags: <defaults>
</compile_context>

<pallas_src>
import functools

import jax
import jax.numpy as jnp
import numpy as np
from jax import lax
from jax.experimental import pallas as pl
from jax.experimental.pallas import tpu as pltpu

_LANE = 128


def _round_up(x, m):
    return (x + m - 1) // m * m


def _chimera_force_kernel(dt_ref, h0_ref, out0_ref, wom_ref, wet_ref, d_ref,
                          newh_ref, newout_ref, traj_ref,
                          *, chunk_steps, total_steps, needs_mask):
    """One (batch_block, time_chunk) grid cell = `chunk_steps` chained forward() steps.

    Shapes (all lane-padded):
      dt_ref                 : (1,)              f32  SMEM
      h0_ref,  newh_ref      : (Bblk, Hp)        f32  VMEM (resident across time axis)
      out0_ref, newout_ref   : (Bblk, Ip)        f32  VMEM (resident across time axis)
      wom_ref                : (Hp, Hp)          wdt  omega^T (whole-array resident)
      wet_ref                : (Ip, Hp)          wdt  eta^T   (whole-array resident)
      d_ref                  : (Hp, Ip)          wdt
      traj_ref               : (chunk, Bblk, Ip) f32  streamed per-chunk readouts
    """
    t_chunk = pl.program_id(1)
    dt = dt_ref[0]
    one_minus_dt = 1.0 - dt
    wdt = wom_ref.dtype

    # First time-chunk of this batch block: seed the resident state buffers.
    @pl.when(t_chunk == 0)
    def _():
        newh_ref[...] = h0_ref[...]
        newout_ref[...] = out0_ref[...]

    g0 = t_chunk * chunk_steps          # global index of this chunk's first step

    def step(i, carry):
        h, o = carry                                             # f32 (Bblk,Hp),(Bblk,Ip)
        r = jnp.tanh(h)                                          # old r (EUP)
        rw = r.astype(wdt)
        # omega @ r + eta @ out  as two lane-dense MXU matmuls, f32 accumulation.
        z = jnp.dot(rw, wom_ref[...], preferred_element_type=jnp.float32)
        z = z + jnp.dot(o.astype(wdt), wet_ref[...],
                        preferred_element_type=jnp.float32)      # (Bblk, Hp)
        h_new = one_minus_dt * h + dt * z                        # == h + dt*(-h + z)
        # out' = d^T @ r  with the pre-update r (matches the module).
        o_new = jnp.dot(rw, d_ref[...], preferred_element_type=jnp.float32)
        traj_ref[i] = o_new                                      # lane-dense store
        if needs_mask:
            # Padded tail steps of the last chunk: hold the state unchanged.
            keep = ((g0 + i) < total_steps).astype(jnp.float32)
            h_new = keep * h_new + (1.0 - keep) * h
            o_new = keep * o_new + (1.0 - keep) * o
        return h_new, o_new

    h_fin, o_fin = lax.fori_loop(
        0, chunk_steps, step, (newh_ref[...], newout_ref[...]),
        unroll=int(min(4, chunk_steps)))
    newh_ref[...] = h_fin
    newout_ref[...] = o_fin


def pack_weights(omega, eta, d, weight_dtype=jnp.bfloat16):
    """One-time (model-setup) weight packing.

    Returns lane-padded, pre-transposed weights:
      w_omega_t : (Hp, Hp) = omega^T
      w_eta_t   : (Ip, Hp) = eta^T
      d_packed  : (Hp, Ip)
    Default dtype is bf16 (native MXU input width, half the resident VMEM and
    the one-time HBM->VMEM DMA); accumulation in the kernel is always f32.
    """
    H = omega.shape[0]
    I = eta.shape[1]
    Hp = _round_up(H, _LANE)
    Ip = _round_up(max(I, 1), _LANE)

    w_om = jnp.zeros((Hp, Hp), jnp.float32)
    w_om = w_om.at[:H, :H].set(jnp.asarray(omega, jnp.float32).T)
    w_et = jnp.zeros((Ip, Hp), jnp.float32)
    w_et = w_et.at[:I, :H].set(jnp.asarray(eta, jnp.float32).T)
    d_p = jnp.zeros((Hp, Ip), jnp.float32)
    d_p = d_p.at[:H, :I].set(jnp.asarray(d, jnp.float32))
    return (w_om.astype(weight_dtype), w_et.astype(weight_dtype),
            d_p.astype(weight_dtype))


def chimera_force_rollout(h, out, w_omega_t, w_eta_t, d_packed, eval_dt=1.0,
                          num_steps=1, *, time_chunk=None, batch_block=None):
    """Run `num_steps` chimeraFORCE.forward() steps in ONE pallas_call.

    h:   (H,) or (B, H)   hidden state(s)  (batch = independent ensemble states;
                           use B a multiple of 128/256 to saturate the MXU)
    out: (I,) or (B, I)   readout state(s)
    time_chunk  : steps per streamed trajectory block (bounds VMEM; default <=16)
    batch_block : rows per grid batch block; set to B//2 on v7x to use both
                  TensorCores (must be a multiple of 8 when splitting).
    Returns (new_h, new_out, out_traj) with out_traj[t] = readout after step t.
    """
    assert num_steps >= 1
    squeeze = (h.ndim == 1)
    h2 = jnp.atleast_2d(jnp.asarray(h, jnp.float32))
    o2 = jnp.atleast_2d(jnp.asarray(out, jnp.float32))
    B, H = h2.shape
    I = o2.shape[1]
    Hp = w_omega_t.shape[1]
    Ip = w_eta_t.shape[0]
    assert w_omega_t.shape == (Hp, Hp) and d_packed.shape == (Hp, Ip)
    assert H <= Hp and I <= Ip and o2.shape[0] == B

    h_pad = jnp.zeros((B, Hp), jnp.float32).at[:, :H].set(h2)
    o_pad = jnp.zeros((B, Ip), jnp.float32).at[:, :I].set(o2)
    dt = jnp.asarray(eval_dt, jnp.float32).reshape(1)  # SMEM scalar, no recompile on dt

    chunk = int(time_chunk) if time_chunk is not None else min(num_steps, 16)
    chunk = max(1, min(chunk, num_steps))
    n_chunks = -(-num_steps // chunk)
    t_pad = n_chunks * chunk

    bblk = int(batch_block) if batch_block is not None else B
    assert B % bblk == 0, "batch_block must divide the batch"
    assert bblk == B or bblk % 8 == 0, "batch_block must be a multiple of 8 when splitting"
    n_bblk = B // bblk

    # VMEM budget: weights resident once + (double-buffered) state/traj blocks,
    # plus headroom, clamped to the device's physical VMEM capacity.
    wbytes = jnp.dtype(w_omega_t.dtype).itemsize
    footprint = ((w_omega_t.size + w_eta_t.size + d_packed.size) * wbytes
                 + 4 * 4 * bblk * (Hp + Ip)          # h/out in+out blocks, 2 buffers
                 + 2 * chunk * bblk * Ip * 4)        # streamed traj chunk, 2 buffers
    try:
        vmem_cap = int(pltpu.get_tpu_info().vmem_capacity_bytes)
    except Exception:  # conservative fallback (v7x per-core capacity)
        vmem_cap = 64 * 2 ** 20
    vmem_limit = int(min(vmem_cap - (2 << 20),
                         max(footprint + (8 << 20), 32 << 20)))

    vmem = pltpu.MemorySpace.VMEM
    smem = pltpu.MemorySpace.SMEM

    kernel = functools.partial(
        _chimera_force_kernel, chunk_steps=chunk, total_steps=int(num_steps),
        needs_mask=(t_pad != num_steps))

    new_h, new_out, traj = pl.pallas_call(
        kernel,
        grid=(n_bblk, n_chunks),
        in_specs=[
            pl.BlockSpec(memory_space=smem),                          # dt
            pl.BlockSpec((bblk, Hp), lambda b, t: (b, 0)),            # h0
            pl.BlockSpec((bblk, Ip), lambda b, t: (b, 0)),            # out0
            pl.BlockSpec(memory_space=vmem),                          # omega^T (resident)
            pl.BlockSpec(memory_space=vmem),                          # eta^T   (resident)
            pl.BlockSpec(memory_space=vmem),                          # d       (resident)
        ],
        out_specs=(
            pl.BlockSpec((bblk, Hp), lambda b, t: (b, 0)),            # new_h  (resident over t)
            pl.BlockSpec((bblk, Ip), lambda b, t: (b, 0)),            # new_out(resident over t)
            pl.BlockSpec((chunk, bblk, Ip), lambda b, t: (t, b, 0)),  # streamed traj
        ),
        out_shape=(
            jax.ShapeDtypeStruct((B, Hp), jnp.float32),
            jax.ShapeDtypeStruct((B, Ip), jnp.float32),
            jax.ShapeDtypeStruct((t_pad, B, Ip), jnp.float32),
        ),
        compiler_params=pltpu.CompilerParams(
            dimension_semantics=("parallel", "arbitrary"),
            vmem_limit_bytes=vmem_limit),
    )(dt, h_pad, o_pad, w_omega_t, w_eta_t, d_packed)

    new_h = new_h[:, :H]
    new_out = new_out[:, :I]
    traj = traj[:num_steps, :, :I]
    if squeeze:
        new_h, new_out, traj = new_h[0], new_out[0], traj[:, 0]
    return new_h, new_out, traj


def chimera_force_forward(h, out, omega, eta, d, eval_dt=1.0):
    """Exactly one chimeraFORCE.forward() step (convenience wrapper, f32 weights)."""
    w_om, w_et, d_p = pack_weights(omega, eta, d, weight_dtype=jnp.float32)
    new_h, new_out, _ = chimera_force_rollout(h, out, w_om, w_et, d_p,
                                              eval_dt, num_steps=1)
    return new_h, new_out


def _reference_rollout(h, out, omega, eta, d, eval_dt, num_steps):
    """Pure-JAX reference: `num_steps` chained module forward() steps."""
    traj = []
    for _ in range(num_steps):
        r = jnp.tanh(h)
        dh = -h + r @ omega.T + out @ eta.T
        h = h + eval_dt * dh
        out = r @ d
        traj.append(out)
    return h, out, jnp.stack(traj)


if __name__ == "__main__":
    # Small, deterministic problem consistent with the module's __init__ shapes.
    hidden_size = 256
    input_size = 8
    dens_w0 = 0.1
    rate_w0 = 1.5
    rate_w1 = 1.0
    eval_dt = 1.0

    key = jax.random.PRNGKey(0)
    k_tA, k_mask, k_eta, k_h, k_out, k_d = jax.random.split(key, 6)

    tA = jax.random.normal(k_tA, (hidden_size, hidden_size), dtype=jnp.float32)
    tB = jax.random.uniform(k_mask, (hidden_size, hidden_size)) < dens_w0
    omega = rate_w0 * tA * tB.astype(jnp.float32) / np.sqrt(hidden_size * dens_w0)
    eta = (jax.random.uniform(k_eta, (hidden_size, input_size)) * 2.0 - 1.0) * rate_w1
    # Module initializes d to zeros; use a small random d so the readout path
    # (out' = d^T r) is exercised non-trivially.
    d = 0.01 * jax.random.normal(k_d, (hidden_size, input_size), dtype=jnp.float32)

    # Weights are packed / transposed ONCE (model setup), not per step.
    w_om32, w_et32, d32 = pack_weights(omega, eta, d, weight_dtype=jnp.float32)

    # --- 1) single state, single step: exact chimeraFORCE.forward() semantics ---
    h1 = jax.random.normal(k_h, (hidden_size,), dtype=jnp.float32)
    out1 = jnp.zeros((input_size,), dtype=jnp.float32)   # module inits out = 0
    new_h, new_out, _ = chimera_force_rollout(h1, out1, w_om32, w_et32, d32,
                                              eval_dt, num_steps=1)
    jax.block_until_ready((new_h, new_out))
    ref_h, ref_out, _ = _reference_rollout(h1, out1, omega, eta, d, eval_dt, 1)
    assert np.allclose(np.asarray(new_h), np.asarray(ref_h), rtol=1e-4, atol=1e-4)
    assert np.allclose(np.asarray(new_out), np.asarray(ref_out), rtol=1e-4, atol=1e-4)

    # --- 2) batched multi-step rollout: chunked trajectory streaming + batch-parallel
    #        grid axis (2 batch blocks) + non-divisible num_steps (tail mask path) ---
    batch = 16
    num_steps = 10
    hB = jax.random.normal(k_h, (batch, hidden_size), dtype=jnp.float32)
    outB = 0.1 * jax.random.normal(k_out, (batch, input_size), dtype=jnp.float32)
    new_hB, new_outB, trajB = chimera_force_rollout(
        hB, outB, w_om32, w_et32, d32, eval_dt, num_steps=num_steps,
        time_chunk=4, batch_block=8)
    jax.block_until_ready((new_hB, new_outB, trajB))
    ref_hB, ref_outB, ref_trajB = _reference_rollout(hB, outB, omega, eta, d,
                                                     eval_dt, num_steps)
    assert np.allclose(np.asarray(new_hB), np.asarray(ref_hB), rtol=1e-2, atol=1e-2)
    assert np.allclose(np.asarray(new_outB), np.asarray(ref_outB), rtol=1e-2, atol=1e-2)
    assert np.allclose(np.asarray(trajB), np.asarray(ref_trajB), rtol=1e-2, atol=1e-2)

    # --- 3) bf16-resident weights (default pack dtype; half the VMEM / ~2-3x MXU) ---
    wb_om, wb_et, db = pack_weights(omega, eta, d)        # bf16 by default
    bh, bo, _ = chimera_force_rollout(h1, out1, wb_om, wb_et, db, eval_dt, num_steps=1)
    jax.block_until_ready((bh, bo))
    assert np.allclose(np.asarray(bh), np.asarray(ref_h), rtol=5e-2, atol=5e-2)

    # TODO(synk): the RLS training update (step()/Pinv) and the sample() training
    # loop are host/XLA-side and not part of forward(); they are not ported.
    print("KERNEL_OK")
</pallas_src>

<mosaic_0001>
module attributes {stable_mosaic.version = 11 : i64} {
  func.func @_chimera_force_kernel(%arg0: i32, %arg1: i32, %arg2: memref<1xf32, #tpu.memory_space<smem>>, %arg3: memref<1x256xf32, #tpu.memory_space<vmem>>, %arg4: memref<1x128xf32, #tpu.memory_space<vmem>>, %arg5: memref<256x256xf32, #tpu.memory_space<vmem>>, %arg6: memref<128x256xf32, #tpu.memory_space<vmem>>, %arg7: memref<256x128xf32, #tpu.memory_space<vmem>>, %arg8: memref<1x256xf32, #tpu.memory_space<vmem>>, %arg9: memref<1x128xf32, #tpu.memory_space<vmem>>, %arg10: memref<1x1x128xf32, #tpu.memory_space<vmem>>) attributes {dimension_semantics = [#tpu.dimension_semantics<parallel>, #tpu.dimension_semantics<arbitrary>], iteration_bounds = array<i64: 1, 1>, scalar_prefetch = 0 : i64, scratch_operands = 0 : i64, tpu.core_type = #tpu.core_type<tc>, window_params = [{transform_indices = @transform_0, window_bounds = array<i64: 1>}, {transform_indices = @transform_1, window_bounds = array<i64: 1, 256>}, {transform_indices = @transform_2, window_bounds = array<i64: 1, 128>}, {pipeline_mode = #tpu.pipeline_mode<synchronous>, transform_indices = @transform_3, window_bounds = array<i64: 256, 256>}, {pipeline_mode = #tpu.pipeline_mode<synchronous>, transform_indices = @transform_4, window_bounds = array<i64: 128, 256>}, {pipeline_mode = #tpu.pipeline_mode<synchronous>, transform_indices = @transform_5, window_bounds = array<i64: 256, 128>}, {transform_indices = @transform_6, window_bounds = array<i64: 1, 256>}, {transform_indices = @transform_7, window_bounds = array<i64: 1, 128>}, {transform_indices = @transform_8, window_bounds = array<i64: 1, 1, 128>}]} {
    %c0 = arith.constant 0 : index
    %0 = memref.load %arg2[%c0] : memref<1xf32, #tpu.memory_space<smem>>
    %cst = arith.constant 1.000000e+00 : f32
    %1 = arith.subf %cst, %0 : f32
    %c0_i32 = arith.constant 0 : i32
    %2 = arith.cmpi eq, %arg1, %c0_i32 : i32
    %3 = arith.extui %2 : i1 to i32
    %c0_i32_0 = arith.constant 0 : i32
    %4 = arith.cmpi ne, %3, %c0_i32_0 : i32
    scf.if %4 {
      %c0_21 = arith.constant 0 : index
      %c0_22 = arith.constant 0 : index
      %26 = vector.load %arg3[%c0_21, %c0_22] : memref<1x256xf32, #tpu.memory_space<vmem>>, vector<1x256xf32>
      %c0_23 = arith.constant 0 : index
      %c0_24 = arith.constant 0 : index
      %27 = vector.load %arg8[%c0_23, %c0_24] : memref<1x256xf32, #tpu.memory_space<vmem>>, vector<1x256xf32>
      tpu.vector_store %arg8[%c0_23, %c0_24], %26 {strides = array<i32>} : memref<1x256xf32, #tpu.memory_space<vmem>>, vector<1x256xf32>,
      %c0_25 = arith.constant 0 : index
      %c0_26 = arith.constant 0 : index
      %28 = vector.load %arg4[%c0_25, %c0_26] : memref<1x128xf32, #tpu.memory_space<vmem>>, vector<1x128xf32>
      %c0_27 = arith.constant 0 : index
      %c0_28 = arith.constant 0 : index
      %29 = vector.load %arg9[%c0_27, %c0_28] : memref<1x128xf32, #tpu.memory_space<vmem>>, vector<1x128xf32>
      tpu.vector_store %arg9[%c0_27, %c0_28], %28 {strides = array<i32>} : memref<1x128xf32, #tpu.memory_space<vmem>>, vector<1x128xf32>,
    } else {
    }
    %c0_1 = arith.constant 0 : index
    %c0_2 = arith.constant 0 : index
    %5 = vector.load %arg8[%c0_1, %c0_2] : memref<1x256xf32, #tpu.memory_space<vmem>>, vector<1x256xf32>
    %c0_3 = arith.constant 0 : index
    %c0_4 = arith.constant 0 : index
    %6 = vector.load %arg9[%c0_3, %c0_4] : memref<1x128xf32, #tpu.memory_space<vmem>>, vector<1x128xf32>
    %c0_i32_5 = arith.constant 0 : i32
    %7 = math.tanh %5 : vector<1x256xf32>
    %c0_6 = arith.constant 0 : index
    %c0_7 = arith.constant 0 : index
    %8 = vector.load %arg5[%c0_6, %c0_7] : memref<256x256xf32, #tpu.memory_space<vmem>>, vector<256x256xf32>
    %cst_8 = arith.constant dense<0.000000e+00> : vector<1x256xf32>
    %9 = tpu.matmul %7, %8, %cst_8 {dimension_numbers = #tpu.dot_dimension_numbers<[1], [0], [0], [1], [0, 0, 1, 1], [], []>} : vector<1x256xf32>, vector<256x256xf32>, vector<1x256xf32> -> vector<1x256xf32>
    %c0_9 = arith.constant 0 : index
    %c0_10 = arith.constant 0 : index
    %10 = vector.load %arg6[%c0_9, %c0_10] : memref<128x256xf32, #tpu.memory_space<vmem>>, vector<128x256xf32>
    %cst_11 = arith.constant dense<0.000000e+00> : vector<1x256xf32>
    %11 = tpu.matmul %6, %10, %cst_11 {dimension_numbers = #tpu.dot_dimension_numbers<[1], [0], [0], [1], [0, 0, 1, 1], [], []>} : vector<1x128xf32>, vector<128x256xf32>, vector<1x256xf32> -> vector<1x256xf32>
    %12 = arith.addf %9, %11 : vector<1x256xf32>
    %13 = vector.broadcast %1 : f32 to vector<1x256xf32>
    %14 = arith.mulf %13, %5 : vector<1x256xf32>
    %15 = vector.broadcast %0 : f32 to vector<1x256xf32>
    %16 = arith.mulf %15, %12 : vector<1x256xf32>
    %17 = arith.addf %14, %16 : vector<1x256xf32>
    %c0_12 = arith.constant 0 : index
    %c0_13 = arith.constant 0 : index
    %18 = vector.load %arg7[%c0_12, %c0_13] : memref<256x128xf32, #tpu.memory_space<vmem>>, vector<256x128xf32>
    %cst_14 = arith.constant dense<0.000000e+00> : vector<1x128xf32>
    %19 = tpu.matmul %7, %18, %cst_14 {dimension_numbers = #tpu.dot_dimension_numbers<[1], [0], [0], [1], [0, 0, 1, 1], [], []>} : vector<1x256xf32>, vector<256x128xf32>, vector<1x128xf32> -> vector<1x128xf32>
    %20 = arith.index_cast %c0_i32_5 : i32 to index
    %c0_15 = arith.constant 0 : index
    %c0_16 = arith.constant 0 : index
    %21 = vector.load %arg10[%20, %c0_15, %c0_16] : memref<1x1x128xf32, #tpu.memory_space<vmem>>, vector<1x1x128xf32>
    %22 = vector.shape_cast %21 : vector<1x1x128xf32> to vector<1x128xf32>
    %23 = vector.shape_cast %19 : vector<1x128xf32> to vector<1x1x128xf32>
    tpu.vector_store %arg10[%20, %c0_15, %c0_16], %23 {strides = array<i32>} : memref<1x1x128xf32, #tpu.memory_space<vmem>>, vector<1x1x128xf32>,
    %c1_i32 = arith.constant 1 : i32
    %c0_17 = arith.constant 0 : index
    %c0_18 = arith.constant 0 : index
    %24 = vector.load %arg8[%c0_17, %c0_18] : memref<1x256xf32, #tpu.memory_space<vmem>>, vector<1x256xf32>
    tpu.vector_store %arg8[%c0_17, %c0_18], %17 {strides = array<i32>} : memref<1x256xf32, #tpu.memory_space<vmem>>, vector<1x256xf32>,
    %c0_19 = arith.constant 0 : index
    %c0_20 = arith.constant 0 : index
    %25 = vector.load %arg9[%c0_19, %c0_20] : memref<1x128xf32, #tpu.memory_space<vmem>>, vector<1x128xf32>
    tpu.vector_store %arg9[%c0_19, %c0_20], %19 {strides = array<i32>} : memref<1x128xf32, #tpu.memory_space<vmem>>, vector<1x128xf32>,
    return
  }
  func.func @transform_0(%arg0: i32, %arg1: i32) -> i32 {
    %c0_i32 = arith.constant 0 : i32
    %c0_i32_0 = arith.constant 0 : i32
    return %c0_i32 : i32
  }
  func.func @transform_1(%arg0: i32, %arg1: i32) -> (i32, i32) {
    %c0_i32 = arith.constant 0 : i32
    %c0_i32_0 = arith.constant 0 : i32
    return %arg0, %c0_i32 : i32, i32
  }
  func.func @transform_2(%arg0: i32, %arg1: i32) -> (i32, i32) {
    %c0_i32 = arith.constant 0 : i32
    %c0_i32_0 = arith.constant 0 : i32
    return %arg0, %c0_i32 : i32, i32
  }
  func.func @transform_3(%arg0: i32, %arg1: i32) -> (i32, i32) {
    %c0_i32 = arith.constant 0 : i32
    %c0_i32_0 = arith.constant 0 : i32
    %c0_i32_1 = arith.constant 0 : i32
    return %c0_i32, %c0_i32_0 : i32, i32
  }
  func.func @transform_4(%arg0: i32, %arg1: i32) -> (i32, i32) {
    %c0_i32 = arith.constant 0 : i32
    %c0_i32_0 = arith.constant 0 : i32
    %c0_i32_1 = arith.constant 0 : i32
    return %c0_i32, %c0_i32_0 : i32, i32
  }
  func.func @transform_5(%arg0: i32, %arg1: i32) -> (i32, i32) {
    %c0_i32 = arith.constant 0 : i32
    %c0_i32_0 = arith.constant 0 : i32
    %c0_i32_1 = arith.constant 0 : i32
    return %c0_i32, %c0_i32_0 : i32, i32
  }
  func.func @transform_6(%arg0: i32, %arg1: i32) -> (i32, i32) {
    %c0_i32 = arith.constant 0 : i32
    %c0_i32_0 = arith.constant 0 : i32
    return %arg0, %c0_i32 : i32, i32
  }
  func.func @transform_7(%arg0: i32, %arg1: i32) -> (i32, i32) {
    %c0_i32 = arith.constant 0 : i32
    %c0_i32_0 = arith.constant 0 : i32
    return %arg0, %c0_i32 : i32, i32
  }
  func.func @transform_8(%arg0: i32, %arg1: i32) -> (i32, i32, i32) {
    %c0_i32 = arith.constant 0 : i32
    %c0_i32_0 = arith.constant 0 : i32
    return %arg1, %arg0, %c0_i32 : i32, i32, i32
  }
}

</mosaic_0001>

<bundles_post_ra>
// kernel: tpu_custom_call.1
= control target key start
LH: loop header
LB: loop body
LE: loop exit
PB: predicated region body
PF: predicated region fallthrough
CT: control target
= control target key end

     0   :  { %15 = vsyncpa [#allocation4], 0  ;;  %s1009_s0 = inlined_call_operand.<no memory space> [shape: f32[1], index: 0, kind: input, shape index: {}]   ;;  %s1010_s1 = inlined_call_operand.vmem [shape: f32[1,256], index: 1, kind: input, shape index: {}]   ;;  %s1011_s2 = inlined_call_operand.vmem [shape: f32[1,128], index: 2, kind: input, shape index: {}]   ;;  %s1012_s3 = inlined_call_operand.hbm [shape: f32[256,256], index: 3, kind: input, shape index: {}]   ;;  %s1013_s4 = inlined_call_operand.hbm [shape: f32[128,256], index: 4, kind: input, shape index: {}]   ;;  %s1014_s5 = inlined_call_operand.hbm [shape: f32[256,128], index: 5, kind: input, shape index: {}]   ;;  %s1015_s6 = inlined_call_operand.hbm [shape: f32[1,256], index: 6, kind: output, shape index: {0}]   ;;  %s1016_s7 = inlined_call_operand.hbm [shape: f32[1,128], index: 7, kind: output, shape index: {1}]   ;;  %s1017_s8 = inlined_call_operand.hbm [shape: f32[1,1,128], index: 8, kind: output, shape index: {2}]  }
   0x1   :  { %16 = vsyncpa [#allocation7], 0 }
   0x2   :  { %17 = vsyncpa [#allocation5], 0 }
   0x3   :  { %18 = vsyncpa [#allocation11], 0  ;;  %s831_s27 = smov [#allocation6]   ;;  %s832_s29 = smov [#allocation3]  }
   0x4   :  { %s42_s28 = sshll.u32 %s831_s27, 4  ;;  %s30_s30 = sshll.u32 %s832_s29, 4  ;;  %s43_s28 = int_to_ptr.vmem [resolvable:$true] %s42_s28  ;;  %s888_s30 = int_to_ptr.vmem [resolvable:$true] %s30_s30 }
   0x5   :  { %s691_s11 = scalar_lea.hbm %s1013_s4, 4096 }
   0x6   :  { %p692_p0 = scmp.ne.s32.totalorder %s1013_s4, %s691_s11  ;;  %p695_p1 = scmp.lt.u32.totalorder %s691_s11, %s1013_s4 }
   0x8   :  { %p697_p2 = pnand %p695_p1, %p692_p0 }
   0xa   :  { %700 = shalt.err (!%p697_p2)
}
   0xb   :  { %s701_s16 = scalar_lea.vmem %s43_s28, 4096  ;;  %p706_p4 = scmp.lt.s32.totalorder %s43_s28, %s43_s28 }
   0xc   :  { %p702_p3 = scmp.ne.s32.totalorder %s43_s28, %s701_s16  ;;  %p707_p5 = scmp.lt.s32.totalorder %s701_s16, %s701_s16 }
   0xe   :  { %p708_p6 = por %p707_p5, %p706_p4 }
  0x10   :  { %p709_p7 = pnand %p708_p6, %p702_p3 }
  0x12   :  { %712 = shalt.err (!%p709_p7)
}
  0x13   :  { %s833_s17 = smov 256   ;;  %s834_s18 = smov 16  }
  0x14   :  { %48 = dma.hbm_to_vmem [thread:$0]  %s1013_s4, 4096, %s43_s28, [#allocation7], %s833_s17, %s833_s17, %s834_s18  }
  0x15   :  { %s713_s23 = scalar_lea.hbm %s1012_s3, 8192 }
  0x16   :  { %p714_p8 = scmp.ne.s32.totalorder %s1012_s3, %s713_s23  ;;  %p717_p9 = scmp.lt.u32.totalorder %s713_s23, %s1012_s3 }
  0x18   :  { %p719_p10 = pnand %p717_p9, %p714_p8 }
  0x1a   :  { %722 = shalt.err (!%p719_p10)
}
  0x1b   :  { %s723_s29 = scalar_lea.vmem %s888_s30, 8192  ;;  %p728_p12 = scmp.lt.s32.totalorder %s888_s30, %s888_s30 }
  0x1c   :  { %p724_p11 = scmp.ne.s32.totalorder %s888_s30, %s723_s29  ;;  %p729_p13 = scmp.lt.s32.totalorder %s723_s29, %s723_s29 }
  0x1e   :  { %p730_p0 = por %p729_p13, %p728_p12 }
  0x20   :  { %p731_p1 = pnand %p730_p0, %p724_p11 }
  0x22   :  { %734 = shalt.err (!%p731_p1)
}
  0x23   :  { %36 = dma.hbm_to_vmem [thread:$0]  %s1012_s3, 8192, %s888_s30, [#allocation4], %s833_s17, %s833_s17, %s834_s18  }
  0x24   :  { %s835_s9 = smov [#allocation8]   ;;  %s735_s13 = scalar_lea.hbm %s1014_s5, 4096 }
  0x25   :  { %s54_s10 = sshll.u32 %s835_s9, 4  ;;  %p736_p2 = scmp.ne.s32.totalorder %s1014_s5, %s735_s13  ;;  %s55_s10 = int_to_ptr.vmem [resolvable:$true] %s54_s10 }
  0x26   :  { %p739_p3 = scmp.lt.u32.totalorder %s735_s13, %s1014_s5 }
  0x28   :  { %p741_p4 = pnand %p739_p3, %p736_p2 }
  0x2a   :  { %744 = shalt.err (!%p741_p4)
}
  0x2b   :  { %s745_s20 = scalar_lea.vmem %s55_s10, 4096  ;;  %p750_p6 = scmp.lt.s32.totalorder %s55_s10, %s55_s10 }
  0x2c   :  { %p746_p5 = scmp.ne.s32.totalorder %s55_s10, %s745_s20  ;;  %p751_p7 = scmp.lt.s32.totalorder %s745_s20, %s745_s20 }
  0x2e   :  { %p752_p8 = por %p751_p7, %p750_p6 }
  0x30   :  { %p753_p9 = pnand %p752_p8, %p746_p5 }
  0x32   :  { %756 = shalt.err (!%p753_p9)
}
  0x33   :  { %s836_s3 = smov 128   ;;  %s837_s30 = smov 8  }
  0x34   :  { %60 = dma.hbm_to_vmem [thread:$0]  %s1014_s5, 4096, %s55_s10, [#allocation7], %s836_s3, %s836_s3, %s837_s30  }
  0x35   :  { %823 = dma.done.wait [#allocation4], 8192  }
  0x36   :  { %824 = vsyncadd [#allocation4], 4294959104 }
  0x37   :  { %825 = dma.done.wait [#allocation7], 8192  }
  0x38   :  { %826 = vsyncadd [#allocation7], 4294959104  ;;  %v838_v0 = vmov 0.0   ;;  %v88_v1 = vld [vmem:[#allocation3 + $0x8] sm:$0xff]  ;;  %v90_v2 = vld [vmem:[#allocation3 + $0x18] sm:$0xff]  ;;  %s71_s26 = ssub.f32 1.0, %s1009_s0 }
  0x39   :  { %247 = vmatprep.mubr.f32.mxu1 %v838_v0  ;;  %v87_v3 = vld [vmem:[#allocation3] sm:$0xff]  ;;  %v579_v4 = vpack.c.bf16 %v90_v2, %v88_v1  ;;  %v89_v5 = vld [vmem:[#allocation3 + $0x10] sm:$0xff]  ;;  %v92_v6 = vld [vmem:[#allocation3 + $0x28] sm:$0xff]  ;;  %s840_s27 = smov [#allocation10]   ;;  %s841_s4 = smov [#allocation12]  }
  0x3a   :  { %v94_v7 = vld [vmem:[#allocation3 + $0x38] sm:$0xff]  ;;  %v581_v8 = vpack.c.bf16 %v89_v5, %v87_v3  ;;  %v91_v10 = vld [vmem:[#allocation3 + $0x20] sm:$0xff]  ;;  %v93_v11 = vld [vmem:[#allocation3 + $0x30] sm:$0xff]  ;;  %s485_s29 = sshll.u32 %s840_s27, 4  ;;  %s495_s28 = sshll.u32 %s841_s4, 4  ;;  %s486_s29 = int_to_ptr.vmem [resolvable:$true] %s485_s29  ;;  %s959_s28 = int_to_ptr.vmem [resolvable:$true] %s495_s28 }
  0x3b   :  { %v583_v9 = vpack.c.bf16 %v94_v7, %v92_v6  ;;  %v152_v12 = vld [vmem:[#allocation6 + $0x8] sm:$0xff]  ;;  %580 = vmatprep.subr.bf16.mxu0 %v579_v4  ;;  %v154_v13 = vld [vmem:[#allocation6 + $0x18] sm:$0xff]  ;;  %v585_v16 = vpack.c.bf16 %v93_v11, %v91_v10  ;;  %v151_v18 = vld [vmem:[#allocation6] sm:$0xff]  ;;  %s757_s10 = scalar_lea.vmem %s486_s29, 16  ;;  %s761_s11 = scalar_lea.vmem %s486_s29, 32 }
  0x3c   :  { %v96_v14 = vld [vmem:[#allocation3 + $0x48] sm:$0xff]  ;;  %v98_v15 = vld [vmem:[#allocation3 + $0x58] sm:$0xff]  ;;  %582 = vmatpush1.bf16.msra.mxu0 %v581_v8  ;;  %v547_v17 = vpack.c.bf16 %v154_v13, %v152_v12  ;;  %v153_v19 = vld [vmem:[#allocation6 + $0x10] sm:$0xff]  ;;  %p758_p10 = scmp.ne.s32.totalorder %s486_s29, %s757_s10  ;;  %p762_p11 = scmp.lt.s32.totalorder %s486_s29, %s486_s29 }
  0x3d   :  { %v95_v20 = vld [vmem:[#allocation3 + $0x40] sm:$0xff]  ;;  %584 = vmatprep.subr.bf16.mxu0 %v583_v9  ;;  %v587_v21 = vpack.c.bf16 %v98_v15, %v96_v14  ;;  %v549_v22 = vpack.c.bf16 %v153_v19, %v151_v18  ;;  %v97_v23 = vld [vmem:[#allocation3 + $0x50] sm:$0xff]  ;;  %v156_v24 = vld [vmem:[#allocation6 + $0x28] sm:$0xff]  ;;  %p763_p12 = scmp.lt.s32.totalorder %s761_s11, %s757_s10 }
  0x3e   :  { %v158_v25 = vld [vmem:[#allocation6 + $0x38] sm:$0xff]  ;;  %548 = vmatprep.subr.bf16.mxu1 %v547_v17  ;;  %v100_v27 = vld [vmem:[#allocation3 + $0x68] sm:$0xff]  ;;  %v155_v29 = vld [vmem:[#allocation6 + $0x20] sm:$0xff]  ;;  %v589_v31 = vpack.c.bf16 %v97_v23, %v95_v20 }
  0x3f   :  { %v551_v26 = vpack.c.bf16 %v158_v25, %v156_v24  ;;  %v102_v28 = vld [vmem:[#allocation3 + $0x78] sm:$0xff]  ;;  %550 = vmatpush1.bf16.msra.mxu1 %v549_v22  ;;  %v157_v30 = vld [vmem:[#allocation6 + $0x30] sm:$0xff]  ;;  %v99_v33 = vld [vmem:[#allocation3 + $0x60] sm:$0xff]  ;;  %p764_p13 = por %p763_p12, %p762_p11 }
  0x40   :  { %586 = vmatpush1.bf16.msra.mxu0 %v585_v16  ;;  %v553_v32 = vpack.c.bf16 %v157_v30, %v155_v29  ;;  %v160_v34 = vld [vmem:[#allocation6 + $0x48] sm:$0xff]  ;;  %v162_v35 = vld [vmem:[#allocation6 + $0x58] sm:$0xff]  ;;  %v591_v36 = vpack.c.bf16 %v102_v28, %v100_v27  ;;  %v101_v37 = vld [vmem:[#allocation3 + $0x70] sm:$0xff] }
  0x41   :  { %552 = vmatprep.subr.bf16.mxu1 %v551_v26  ;;  %588 = vmatprep.subr.bf16.mxu0 %v587_v21  ;;  %v555_v38 = vpack.c.bf16 %v162_v35, %v160_v34  ;;  %v159_v39 = vld [vmem:[#allocation6 + $0x40] sm:$0xff]  ;;  %v161_v40 = vld [vmem:[#allocation6 + $0x50] sm:$0xff]  ;;  %v104_v41 = vld [vmem:[#allocation3 + $0x88] sm:$0xff]  ;;  %v593_v46 = vpack.c.bf16 %v101_v37, %v99_v33  ;;  %p765_p0 = pnand %p764_p13, %p758_p10 }
  0x42   :  { %v106_v42 = vld [vmem:[#allocation3 + $0x98] sm:$0xff]  ;;  %v164_v43 = vld [vmem:[#allocation6 + $0x68] sm:$0xff]  ;;  %v557_v44 = vpack.c.bf16 %v161_v40, %v159_v39  ;;  %v103_v47 = vld [vmem:[#allocation3 + $0x80] sm:$0xff] }
  0x43   :  { %554 = vmatpush1.bf16.msra.mxu1 %v553_v32  ;;  %v166_v45 = vld [vmem:[#allocation6 + $0x78] sm:$0xff]  ;;  %v163_v49 = vld [vmem:[#allocation6 + $0x60] sm:$0xff]  ;;  %v165_v50 = vld [vmem:[#allocation6 + $0x70] sm:$0xff]  ;;  %v595_v51 = vpack.c.bf16 %v106_v42, %v104_v41 }
  0x44   :  { %590 = vmatpush1.bf16.msra.mxu0 %v589_v31  ;;  %556 = vmatprep.subr.bf16.mxu1 %v555_v38  ;;  %v559_v48 = vpack.c.bf16 %v166_v45, %v164_v43  ;;  %v105_v52 = vld [vmem:[#allocation3 + $0x90] sm:$0xff]  ;;  %v168_v53 = vld [vmem:[#allocation6 + $0x88] sm:$0xff]  ;;  %v170_v54 = vld [vmem:[#allocation6 + $0x98] sm:$0xff]  ;;  %v561_v57 = vpack.c.bf16 %v165_v50, %v163_v49 }
  0x45   :  { %592 = vmatprep.subr.bf16.mxu0 %v591_v36  ;;  %v108_v55 = vld [vmem:[#allocation3 + $0xa8] sm:$0xff]  ;;  %v110_v56 = vld [vmem:[#allocation3 + $0xb8] sm:$0xff]  ;;  %v597_v58 = vpack.c.bf16 %v105_v52, %v103_v47  ;;  %v107_v59 = vld [vmem:[#allocation3 + $0xa0] sm:$0xff]  ;;  %v563_v60 = vpack.c.bf16 %v170_v54, %v168_v53  ;;  %v77_v54 = vlaneseq }
  0x46   :  { %v167_v61 = vld [vmem:[#allocation6 + $0x80] sm:$0xff]  ;;  %v169_v62 = vld [vmem:[#allocation6 + $0x90] sm:$0xff]  ;;  %v599_v63 = vpack.c.bf16 %v110_v56, %v108_v55  ;;  %v172_v1 = vld [vmem:[#allocation6 + $0xa8] sm:$0xff] }
  0x47   :  { %558 = vmatpush1.bf16.msra.mxu1 %v557_v44  ;;  %v109_v0 = vld [vmem:[#allocation3 + $0xb0] sm:$0xff]  ;;  %v174_v2 = vld [vmem:[#allocation6 + $0xb8] sm:$0xff]  ;;  %v112_v3 = vld [vmem:[#allocation3 + $0xc8] sm:$0xff]  ;;  %v565_v5 = vpack.c.bf16 %v169_v62, %v167_v61  ;;  %vm935_vm0 = vcmp.lt.s32.totalorder %v77_v54, 256 }
  0x48   :  { %594 = vmatpush1.bf16.msra.mxu0 %v593_v46  ;;  %560 = vmatprep.subr.bf16.mxu1 %v559_v48  ;;  %v114_v4 = vld [vmem:[#allocation3 + $0xd8] sm:$0xff]  ;;  %v601_v6 = vpack.c.bf16 %v109_v0, %v107_v59  ;;  %v111_v7 = vld [vmem:[#allocation3 + $0xc0] sm:$0xff]  ;;  %v567_v8 = vpack.c.bf16 %v174_v2, %v172_v1  ;;  %v173_v10 = vld [vmem:[#allocation6 + $0xb0] sm:$0xff] }
  0x49   :  { %596 = vmatprep.subr.bf16.mxu0 %v595_v51  ;;  %v171_v9 = vld [vmem:[#allocation6 + $0xa0] sm:$0xff]  ;;  %v603_v11 = vpack.c.bf16 %v114_v4, %v112_v3  ;;  %v113_v12 = vld [vmem:[#allocation3 + $0xd0] sm:$0xff]  ;;  %v176_v13 = vld [vmem:[#allocation6 + $0xc8] sm:$0xff] }
  0x4a   :  { %v178_v14 = vld [vmem:[#allocation6 + $0xd8] sm:$0xff]  ;;  %v116_v15 = vld [vmem:[#allocation3 + $0xe8] sm:$0xff]  ;;  %v569_v17 = vpack.c.bf16 %v173_v10, %v171_v9  ;;  %v115_v18 = vld [vmem:[#allocation3 + $0xe0] sm:$0xff]  ;;  %v605_v19 = vpack.c.bf16 %v113_v12, %v111_v7 }
  0x4b   :  { %562 = vmatpush1.bf16.msra.mxu1 %v561_v57  ;;  %v118_v16 = vld [vmem:[#allocation3 + $0xf8] sm:$0xff]  ;;  %v117_v20 = vld [vmem:[#allocation3 + $0xf0] sm:$0xff]  ;;  %v571_v21 = vpack.c.bf16 %v178_v14, %v176_v13  ;;  %v175_v22 = vld [vmem:[#allocation6 + $0xc0] sm:$0xff] }
  0x4c   :  { %598 = vmatpush1.bf16.msra.mxu0 %v597_v58  ;;  %564 = vmatprep.subr.bf16.mxu1 %v563_v60  ;;  %v177_v23 = vld [vmem:[#allocation6 + $0xd0] sm:$0xff]  ;;  %v607_v24 = vpack.c.bf16 %v118_v16, %v116_v15  ;;  %v180_v25 = vld [vmem:[#allocation6 + $0xe8] sm:$0xff]  ;;  %v182_v26 = vld [vmem:[#allocation6 + $0xf8] sm:$0xff]  ;;  %v609_v31 = vpack.c.bf16 %v117_v20, %v115_v18 }
  0x4d   :  { %600 = vmatprep.subr.bf16.mxu0 %v599_v63  ;;  %v82_v27 = vld [vmem:[%s1011_s2] sm:$0x1]  ;;  %v120_v28 = vld [vmem:[#allocation3 + $0x108] sm:$0xff]  ;;  %v122_v29 = vld [vmem:[#allocation3 + $0x118] sm:$0xff]  ;;  %v573_v30 = vpack.c.bf16 %v177_v23, %v175_v22  ;;  %v575_v33 = vpack.c.bf16 %v182_v26, %v180_v25 }
  0x4e   :  { %83 = vst [vmem:[#allocation10] sm:$0x1] %v82_v27  ;;  %v119_v32 = vld [vmem:[#allocation3 + $0x100] sm:$0xff]  ;;  %v181_v35 = vld [vmem:[#allocation6 + $0xf0] sm:$0xff]  ;;  %v611_v36 = vpack.c.bf16 %v122_v29, %v120_v28  ;;  %v377_v39 = vld [vmem:[#allocation8 + $0x88] sm:$0xff] }
  0x4f   :  { %566 = vmatpush1.bf16.msra.mxu1 %v565_v5  ;;  %v179_v34 = vld [vmem:[#allocation6 + $0xe0] sm:$0xff]  ;;  %v121_v37 = vld [vmem:[#allocation3 + $0x110] sm:$0xff]  ;;  %v124_v40 = vld [vmem:[#allocation3 + $0x128] sm:$0xff] }
  0x50   :  { %602 = vmatpush1.bf16.msra.mxu0 %v601_v6  ;;  %568 = vmatprep.subr.bf16.mxu1 %v567_v8  ;;  %v376_v38 = vld [vmem:[#allocation8 + $0x80] sm:$0xff]  ;;  %v126_v41 = vld [vmem:[#allocation3 + $0x138] sm:$0xff]  ;;  %v577_v42 = vpack.c.bf16 %v181_v35, %v179_v34  ;;  %v613_v43 = vpack.c.bf16 %v121_v37, %v119_v32  ;;  %v361_v47 = vld [vmem:[#allocation8 + $0x8] sm:$0xff] }
  0x51   :  { %604 = vmatprep.subr.bf16.mxu0 %v603_v11  ;;  %v123_v44 = vld [vmem:[#allocation3 + $0x120] sm:$0xff]  ;;  %v643_v45 = vpack.c.bf16 %v377_v39, %v376_v38  ;;  %v615_v48 = vpack.c.bf16 %v126_v41, %v124_v40  ;;  %v125_v49 = vld [vmem:[#allocation3 + $0x130] sm:$0xff]  ;;  %v379_v51 = vld [vmem:[#allocation8 + $0x98] sm:$0xff] }
  0x52   :  { %v360_v46 = vld [vmem:[#allocation8] sm:$0xff]  ;;  %v378_v50 = vld [vmem:[#allocation8 + $0x90] sm:$0xff]  ;;  %v128_v52 = vld [vmem:[#allocation3 + $0x148] sm:$0xff]  ;;  %v617_v57 = vpack.c.bf16 %v125_v49, %v123_v44  ;;  %v948_v49 = vshrl.u32 %v77_v54, 7 }
  0x53   :  { %570 = vmatpush1.bf16.msra.mxu1 %v569_v17  ;;  %v130_v53 = vld [vmem:[#allocation3 + $0x158] sm:$0xff]  ;;  %v645_v56 = vpack.c.bf16 %v361_v47, %v360_v46  ;;  %v127_v58 = vld [vmem:[#allocation3 + $0x140] sm:$0xff]  ;;  %v647_v59 = vpack.c.bf16 %v379_v51, %v378_v50  ;;  %v362_v60 = vld [vmem:[#allocation8 + $0x10] sm:$0xff] }
  0x54   :  { %606 = vmatpush1.bf16.msra.mxu0 %v605_v19  ;;  %572 = vmatprep.subr.bf16.mxu1 %v571_v21  ;;  %v363_v61 = vld [vmem:[#allocation8 + $0x18] sm:$0xff]  ;;  %v619_v62 = vpack.c.bf16 %v130_v53, %v128_v52  ;;  %v129_v63 = vld [vmem:[#allocation3 + $0x150] sm:$0xff]  ;;  %v380_v0 = vld [vmem:[#allocation8 + $0xa0] sm:$0xff] }
  0x55   :  { %608 = vmatprep.subr.bf16.mxu0 %v607_v24  ;;  %v85_v55 = vld [vmem:[#allocation10] sm:$0x1]  ;;  %v381_v1 = vld [vmem:[#allocation8 + $0xa8] sm:$0xff]  ;;  %v134_v3 = vld [vmem:[#allocation3 + $0x178] sm:$0xff]  ;;  %v649_v6 = vpack.c.bf16 %v363_v61, %v362_v60  ;;  %v621_v7 = vpack.c.bf16 %v129_v63, %v127_v58  ;;  %v261_v60 = vsub.s32 1, %v948_v49 }
  0x56   :  { %v132_v2 = vld [vmem:[#allocation3 + $0x168] sm:$0xff]  ;;  %v131_v5 = vld [vmem:[#allocation3 + $0x160] sm:$0xff]  ;;  %v651_v8 = vpack.c.bf16 %v381_v1, %v380_v0  ;;  %v133_v13 = vld [vmem:[#allocation3 + $0x170] sm:$0xff] }
  0x57   :  { %574 = vmatpush1.bf16.msra.mxu1 %v573_v30  ;;  %v364_v9 = vld [vmem:[#allocation8 + $0x20] sm:$0xff]  ;;  %v365_v10 = vld [vmem:[#allocation8 + $0x28] sm:$0xff]  ;;  %v623_v12 = vpack.c.bf16 %v134_v3, %v132_v2  ;;  %v382_v14 = vld [vmem:[#allocation8 + $0xb0] sm:$0xff]  ;;  %v625_v19 = vpack.c.bf16 %v133_v13, %v131_v5  ;;  %v257_v5 = vsub.s32 0, %v948_v49 }
  0x58   :  { %610 = vmatpush1.bf16.msra.mxu0 %v609_v31  ;;  %576 = vmatprep.subr.bf16.mxu1 %v575_v33  ;;  %v76_v11 = vld [vmem:[%s1010_s1] sm:$0x3]  ;;  %v383_v15 = vld [vmem:[#allocation8 + $0xb8] sm:$0xff]  ;;  %v136_v16 = vld [vmem:[#allocation3 + $0x188] sm:$0xff]  ;;  %v653_v18 = vpack.c.bf16 %v365_v10, %v364_v9 }
  0x59   :  { %612 = vmatprep.subr.bf16.mxu0 %v611_v36  ;;  %81 = vst.msk [vmem:[#allocation9] sm:$0x3] %vm935_vm0, %v76_v11  ;;  %v138_v17 = vld [vmem:[#allocation3 + $0x198] sm:$0xff]  ;;  %v135_v20 = vld [vmem:[#allocation3 + $0x180] sm:$0xff]  ;;  %v655_v21 = vpack.c.bf16 %v383_v15, %v382_v14  ;;  %v366_v22 = vld [vmem:[#allocation8 + $0x30] sm:$0xff] }
  0x5a   :  { %v367_v23 = vld [vmem:[#allocation8 + $0x38] sm:$0xff]  ;;  %v627_v24 = vpack.c.bf16 %v138_v17, %v136_v16  ;;  %v137_v25 = vld [vmem:[#allocation3 + $0x190] sm:$0xff]  ;;  %v384_v26 = vld [vmem:[#allocation8 + $0xc0] sm:$0xff]  ;;  %v839_v16 = vmov 1966171168  }
  0x5b   :  { %578 = vmatpush1.bf16.msra.mxu1 %v577_v42  ;;  %v385_v27 = vld [vmem:[#allocation8 + $0xc8] sm:$0xff]  ;;  %v142_v29 = vld [vmem:[#allocation3 + $0x1b8] sm:$0xff]  ;;  %v139_v30 = vld [vmem:[#allocation3 + $0x1a0] sm:$0xff]  ;;  %v657_v31 = vpack.c.bf16 %v367_v23, %v366_v22  ;;  %v629_v32 = vpack.c.bf16 %v137_v25, %v135_v20  ;;  %v345_v17 = vunpack.c.l.s4 %v839_v16 }
  0x5c   :  { %614 = vmatpush1.bf16.msra.mxu0 %v613_v43  ;;  %644 = vmatprep.subr.bf16.mxu1 %v643_v45  ;;  %v140_v28 = vld [vmem:[#allocation3 + $0x1a8] sm:$0xff]  ;;  %v659_v33 = vpack.c.bf16 %v385_v27, %v384_v26  ;;  %v368_v34 = vld [vmem:[#allocation8 + $0x40] sm:$0xff]  ;;  %v141_v38 = vld [vmem:[#allocation3 + $0x1b0] sm:$0xff] }
  0x5d   :  { %616 = vmatprep.subr.bf16.mxu0 %v615_v48  ;;  %v369_v35 = vld [vmem:[#allocation8 + $0x48] sm:$0xff]  ;;  %v631_v37 = vpack.c.bf16 %v142_v29, %v140_v28  ;;  %v386_v39 = vld [vmem:[#allocation8 + $0xd0] sm:$0xff]  ;;  %v387_v40 = vld [vmem:[#allocation8 + $0xd8] sm:$0xff]  ;;  %v633_v44 = vpack.c.bf16 %v141_v38, %v139_v30  ;;  %v346_v20 = vunpack.c.0.s8 %v345_v17  ;;  %v336_v29 = vstv %s71_s26 }
  0x5e   :  { %248 = vmatmul.mubr.f32.vlgmr.msra.gmra.mrb[0].mxu1 %v85_v55  ;;  %v144_v41 = vld [vmem:[#allocation3 + $0x1c8] sm:$0xff]  ;;  %v146_v42 = vld [vmem:[#allocation3 + $0x1d8] sm:$0xff]  ;;  %v661_v43 = vpack.c.bf16 %v369_v35, %v368_v34  ;;  %v143_v45 = vld [vmem:[#allocation3 + $0x1c0] sm:$0xff]  ;;  %v663_v46 = vpack.c.bf16 %v387_v40, %v386_v39 }
  0x5f   :  { %646 = vmatpush3.bf16.msra.mxu1 %v645_v56  ;;  %v370_v47 = vld [vmem:[#allocation8 + $0x50] sm:$0xff]  ;;  %v371_v48 = vld [vmem:[#allocation8 + $0x58] sm:$0xff]  ;;  %v635_v50 = vpack.c.bf16 %v146_v42, %v144_v41  ;;  %v388_v52 = vld [vmem:[#allocation8 + $0xe0] sm:$0xff]  ;;  %v349_v27 = vsub.s32 %v346_v20, %v948_v49 }
  0x60   :  { %618 = vmatpush1.bf16.msra.mxu0 %v617_v57  ;;  %648 = vmatprep.subr.bf16.mxu1 %v647_v59  ;;  %v944_v36 = vld [vmem:[#allocation9] sm:$0x3]  ;;  %v145_v51 = vld [vmem:[#allocation3 + $0x1d0] sm:$0xff]  ;;  %v389_v53 = vld [vmem:[#allocation8 + $0xe8] sm:$0xff]  ;;  %v665_v57 = vpack.c.bf16 %v371_v48, %v370_v47 }
  0x61   :  { %620 = vmatprep.subr.bf16.mxu0 %v619_v62  ;;  %689 = vtanh.f32 %v944_v36  ;;  %v148_v55 = vld [vmem:[#allocation3 + $0x1e8] sm:$0xff]  ;;  %v150_v56 = vld [vmem:[#allocation3 + $0x1f8] sm:$0xff]  ;;  %v637_v58 = vpack.c.bf16 %v145_v51, %v143_v45  ;;  %v147_v59 = vld [vmem:[#allocation3 + $0x1e0] sm:$0xff]  ;;  %v667_v61 = vpack.c.bf16 %v389_v53, %v388_v52 }
  0x62   :  { %v372_v62 = vld [vmem:[#allocation8 + $0x60] sm:$0xff]  ;;  %v373_v63 = vld [vmem:[#allocation8 + $0x68] sm:$0xff]  ;;  %v639_v54 = vpack.c.bf16 %v150_v56, %v148_v55  ;;  %v149_v0 = vld [vmem:[#allocation3 + $0x1f0] sm:$0xff] }
  0x63   :  { %650 = vmatpush3.bf16.msra.mxu1 %v649_v6  ;;  %v390_v1 = vld [vmem:[#allocation8 + $0xf0] sm:$0xff]  ;;  %v391_v2 = vld [vmem:[#allocation8 + $0xf8] sm:$0xff]  ;;  %v669_v6 = vpack.c.bf16 %v373_v63, %v372_v62 }
  0x64   :  { %622 = vmatpush1.bf16.msra.mxu0 %v621_v7  ;;  %652 = vmatprep.subr.bf16.mxu1 %v651_v8  ;;  %v641_v7 = vpack.c.bf16 %v149_v0, %v147_v59  ;;  %v671_v9 = vpack.c.bf16 %v391_v2, %v390_v1  ;;  %v374_v10 = vld [vmem:[#allocation8 + $0x70] sm:$0xff]  ;;  %v375_v11 = vld [vmem:[#allocation8 + $0x78] sm:$0xff] }
  0x65   :  { %624 = vmatprep.subr.bf16.mxu0 %v623_v12  ;;  %v673_v13 = vpack.c.bf16 %v375_v11, %v374_v10 }
  0x67   :  { %654 = vmatpush3.bf16.msra.mxu1 %v653_v18 }
  0x68   :  { %626 = vmatpush1.bf16.msra.mxu0 %v625_v19  ;;  %656 = vmatprep.subr.bf16.mxu1 %v655_v21  ;;  %v338_v19 = vstv %s1009_s0  ;;  %s842_s0 = smov [#allocation9]  }
  0x69   :  { %628 = vmatprep.subr.bf16.mxu0 %v627_v24  ;;  %s961_s9 = sshll.u32 %s842_s0, 4  ;;  %s476_s9 = int_to_ptr.vmem [resolvable:$true] %s961_s9 }
  0x6b   :  { %658 = vmatpush3.bf16.msra.mxu1 %v657_v31  ;;  %v690_v3 = vpop.eup %689 }
  0x6c   :  { %630 = vmatpush1.bf16.msra.mxu0 %v629_v32  ;;  %660 = vmatprep.subr.bf16.mxu1 %v659_v33  ;;  %v262_v8 = vrot.slane %v690_v3, %v261_v60  ;;  %v258_v12 = vrot.slane %v690_v3, %v257_v5  ;;  %v337_v32 = vmul.f32 %v336_v29, %v944_v36 }
  0x6d   :  { %632 = vmatprep.subr.bf16.mxu0 %v631_v37 }
  0x6e   :  { %329 = vmatprep.mubr.f32.mxu0 %v262_v8  ;;  %456 = vmatprep.mubr.f32.mxu1 %v262_v8 }
  0x6f   :  { %662 = vmatpush3.bf16.msra.mxu1 %v661_v43 }
  0x70   :  { %634 = vmatpush1.bf16.msra.mxu0 %v633_v44  ;;  %664 = vmatprep.subr.bf16.mxu1 %v663_v46 }
  0x71   :  { %636 = vmatprep.subr.bf16.mxu0 %v635_v50 }
  0x73   :  { %666 = vmatpush3.bf16.msra.mxu1 %v665_v57 }
  0x74   :  { %638 = vmatpush1.bf16.msra.mxu0 %v637_v58  ;;  %668 = vmatprep.subr.bf16.mxu1 %v667_v61 }
  0x75   :  { %640 = vmatprep.subr.bf16.mxu0 %v639_v54 }
  0x77   :  { %670 = vmatpush3.bf16.msra.mxu1 %v669_v6 }
  0x78   :  { %642 = vmatpush1.bf16.msra.mxu0 %v641_v7  ;;  %672 = vmatprep.subr.bf16.mxu1 %v671_v9 }
  0x7b   :  { %330 = vmatmul.mubr.f32.vlgmr.msra.gmra.mrb[0].mxu0 %v258_v12  ;;  %674 = vmatpush3.bf16.msra.mxu1 %v673_v13 }
  0x7e   :  { %457 = vmatmul.mubr.f32.vlgmr.msra.gmra.mrb[2].mxu1 %v258_v12 }
 0x131   :  { %v249_v14 = vpop.f32.mrb[0].mxu1 }
 0x132   :  { %v251_v15 = vpop.f32.mrb[1].mxu1 }
 0x14e   :  { %v331_v18 = vpop.f32.mrb[0].mxu0 }
 0x14f   :  { %v332_v21 = vadd.f32 %v331_v18, %v249_v14  ;;  %v333_v22 = vpop.f32.mrb[1].mxu0 }
 0x150   :  { %v334_v23 = vadd.f32 %v333_v22, %v251_v15 }
 0x151   :  { %v339_v24 = vmul.f32 %v338_v19, %v332_v21  ;;  %v544_v25 = vpop.f32.mrb[2].mxu1 }
 0x152   :  { %v340_v26 = vmul.f32 %v338_v19, %v334_v23  ;;  %v545_v28 = vpop.f32.mrb[3].mxu1 }
 0x153   :  { %v546_v30 = vadd.f32 %v545_v28, %v544_v25 }
 0x154   :  { %v343_v31 = vcombine.low %v339_v24, %v340_v26 }
 0x155   :  { %462 = vst [vmem:[#allocation12] sm:$0x1] %v546_v30  ;;  %468 = vst [vmem:[#allocation10] sm:$0x1] %v546_v30 }
 0x156   :  { %v350_v33 = vrot.slane %v343_v31, %v349_v27 }
 0x157   :  { %768 = shalt.err (!%p765_p0)
}
 0x158   :  { %s769_s14 = scalar_lea.hbm %s1016_s7, 16 }
 0x159   :  { %p770_p1 = scmp.ne.s32.totalorder %s1016_s7, %s769_s14  ;;  %p773_p2 = scmp.lt.u32.totalorder %s769_s14, %s1016_s7 }
 0x15b   :  { %p775_p3 = pnand %p773_p2, %p770_p1 }
 0x15d   :  { %778 = shalt.err (!%p775_p3)
}
 0x15e   :  { %488 = dma.vmem_to_hbm [thread:$0]  %s486_s29, 16, %s1016_s7, [#allocation11]  }
 0x15f   :  { %s779_s17 = scalar_lea.vmem %s959_s28, 16  ;;  %s783_s18 = scalar_lea.vmem %s959_s28, 32 }
 0x160   :  { %p780_p4 = scmp.ne.s32.totalorder %s959_s28, %s779_s17  ;;  %p784_p5 = scmp.lt.s32.totalorder %s959_s28, %s959_s28 }
 0x161   :  { %p785_p6 = scmp.lt.s32.totalorder %s783_s18, %s779_s17 }
 0x163   :  { %p786_p7 = por %p785_p6, %p784_p5 }
 0x165   :  { %p787_p8 = pnand %p786_p7, %p780_p4 }
 0x167   :  { %790 = shalt.err (!%p787_p8)
}
 0x168   :  { %s791_s2 = scalar_lea.hbm %s1017_s8, 16 }
 0x169   :  { %p792_p9 = scmp.ne.s32.totalorder %s1017_s8, %s791_s2  ;;  %p795_p10 = scmp.lt.u32.totalorder %s791_s2, %s1017_s8 }
 0x16b   :  { %p797_p11 = pnand %p795_p10, %p792_p9 }
 0x16d   :  { %800 = shalt.err (!%p797_p11)
}
 0x16e   :  { %498 = dma.vmem_to_hbm [thread:$0]  %s959_s28, 16, %s1017_s8, [#allocation11]   ;;  %v357_v34 = vrot.slane %v350_v33, %v349_v27 }
 0x16f   :  { %s801_s26 = scalar_lea.vmem %s476_s9, 32  ;;  %p806_p13 = scmp.lt.s32.totalorder %s476_s9, %s476_s9 }
 0x170   :  { %v359_v35 = vadd.f32 %v357_v34, %v337_v32  ;;  %p802_p12 = scmp.ne.s32.totalorder %s476_s9, %s801_s26  ;;  %p807_p0 = scmp.lt.s32.totalorder %s801_s26, %s801_s26 }
 0x172   :  { %467 = vst.msk [vmem:[#allocation9] sm:$0x3] %vm935_vm0, %v359_v35  ;;  %p808_p1 = por %p807_p0, %p806_p13 }
 0x174   :  { %p809_p2 = pnand %p808_p1, %p802_p12 }
 0x176   :  { %812 = shalt.err (!%p809_p2)
}
 0x177   :  { %s813_s4 = scalar_lea.hbm %s1015_s6, 32 }
 0x178   :  { %p814_p3 = scmp.ne.s32.totalorder %s1015_s6, %s813_s4  ;;  %p817_p4 = scmp.lt.u32.totalorder %s813_s4, %s1015_s6 }
 0x17a   :  { %p819_p5 = pnand %p817_p4, %p814_p3 }
 0x17c   :  { %822 = shalt.err (!%p819_p5)
}
 0x17d   :  { %478 = dma.vmem_to_hbm [thread:$0]  %s476_s9, 32, %s1015_s6, [#allocation5]  }
 0x17e   :  { %827 = dma.done.wait [#allocation5], 32  }
 0x17f   :  { %828 = vsyncadd [#allocation5], 4294967264 }
 0x180   :  { %829 = dma.done.wait [#allocation11], 32  }
 0x181   :  { %830 = vsyncadd [#allocation11], 4294967264 }
 0x182   :  { %508 = vsyncpa [#allocation4], 1 }
 0x183   :  { %509 = vsyncpa [#allocation7], 1 }
 0x184   :  { %510 = vsyncpa [#allocation5], 1 }
 0x185   :  { %511 = vsyncpa [#allocation11], 1 }

</bundles_post_ra>
